<compile_context>
chip_gen: v5e
topology: v5e:2x2
jax: 0.10.0
libtpu: 0.0.40
codegen_flags: <defaults>
</compile_context>

<pallas_src>
import functools

import jax
import jax.numpy as jnp
from jax import lax
from jax.experimental import pallas as pl
from jax.experimental.pallas import tpu as pltpu

INPUT_SIZE = 8      # module `input_size`
HIDDEN = 32         # module `hidden_size`
NUM_ARMS = 4        # module `num_arms`
LAMBD = 1.0
NU = 0.1


def _round_up(x, m):
    return ((x + m - 1) // m) * m


def _pad_lanes(x, width):
    """Zero-pad the last (lane) dim of x up to `width` (no-op if equal)."""
    cur = x.shape[-1]
    if cur == width:
        return x
    pad = jnp.zeros(x.shape[:-1] + (width - cur,), x.dtype)
    return jnp.concatenate([x, pad], axis=-1)


# ----------------------------------------------------------------------------
# Fused kernel: LSTM step + fc + softmax + analytic per-arm grads + UCB sigma
#               + argmax + selected reward + in-place U update.
# ----------------------------------------------------------------------------
def _fused_kernel(state_ref, static_ref, w_ref, uxh_ref, usmall_ref,
                  out_ref, uxh_new_ref, usmall_new_ref,
                  *, hidden_size, num_arms, lambd, nu):
    H = hidden_size
    A = num_arms
    H4 = 4 * H
    DPH = w_ref.shape[0]          # input_size + 1 + hidden_size
    Wo = out_ref.shape[-1]
    Wu = usmall_ref.shape[-1]

    # ---- unpack per-step state slab and packed-parameter slab ----
    xh = state_ref[0:1, 0:DPH]                       # (1, D+H)  [x ; prev_r ; h0]
    c0 = state_ref[1:2, 0:H]                         # (1, H)
    b = static_ref[0:1, 0:H4]                        # (1, 4H)   b_ih + b_hh
    fcw = static_ref[1:1 + A, 0:H]                   # (A, H)
    fcb_col = static_ref[1:1 + A, H:H + 1]           # (A, 1)

    # ---- LSTM cell step: single fused gate matmul over [x ; prev_r ; h0] ----
    gates = jnp.dot(xh, w_ref[...], preferred_element_type=jnp.float32) + b
    sig = jax.nn.sigmoid(gates)                      # two full-width transcendental
    tnh = jnp.tanh(gates)                            # passes instead of four narrow ones
    i = sig[:, 0:H]
    f = sig[:, H:2 * H]
    g = tnh[:, 2 * H:3 * H]
    o = sig[:, 3 * H:4 * H]
    c1 = f * c0 + i * g                              # (1, H)
    tanh_c1 = jnp.tanh(c1)
    h1 = o * tanh_c1                                 # (1, H)

    # ---- fc_rewards + softmax, per-arm COLUMN layout (sublane = arm) ----
    rewards_col = jnp.sum(fcw * h1, axis=-1, keepdims=True) + fcb_col    # (A, 1)
    m = jnp.max(rewards_col, axis=0, keepdims=True)
    e = jnp.exp(rewards_col - m)
    probs_col = e / jnp.sum(e, axis=0, keepdims=True)   # exact: one tiny divide

    # ---- analytic per-arm backward of a single LSTM step (rank-1 Jacobian) ----
    dh1 = fcw                                         # d r_a / d h1 = fc_w[a, :]
    dc1 = dh1 * (o * (1.0 - tanh_c1 * tanh_c1))       # (A, H)
    dzi = dc1 * (g * (i * (1.0 - i)))
    dzf = dc1 * (c0 * (f * (1.0 - f)))
    dzg = dc1 * (i * (1.0 - g * g))
    dzo = dh1 * (tanh_c1 * (o * (1.0 - o)))
    # squared gate deltas assembled in registers, PyTorch gate order [i,f,g,o]
    dgates_sq = jnp.concatenate(
        [dzi * dzi, dzf * dzf, dzg * dzg, dzo * dzo], axis=-1)           # (A, 4H)

    # ---- 1/U pass, exactly once, on the EUP via approx reciprocal ----
    inv_uxh = pl.reciprocal(uxh_ref[...], approx=True)                   # (D+H, 4H)
    inv_ub = pl.reciprocal(usmall_ref[0:2, 0:H4], approx=True)           # (2, 4H)
    inv_ufcw = pl.reciprocal(usmall_ref[2:2 + A, 0:H], approx=True)      # (A, H)
    inv_ufcb_col = pl.reciprocal(usmall_ref[2:2 + A, H:H + 1], approx=True)  # (A,1)

    # sigma_a^2 = lambd * sum_p grads_a[p]^2 / U[p], factored (grads are rank-1)
    xh_sq = xh * xh
    v_xh = jnp.dot(xh_sq, inv_uxh, preferred_element_type=jnp.float32)   # (1, 4H)
    w_vec = v_xh + inv_ub[0:1, :] + inv_ub[1:2, :]                       # (1, 4H)
    lstm_col = jnp.sum(dgates_sq * w_vec, axis=-1, keepdims=True)        # (A, 1)

    h1_sq = h1 * h1
    s_fcw_col = jnp.sum(inv_ufcw * h1_sq, axis=-1, keepdims=True)        # (A, 1)
    fc_col = s_fcw_col + inv_ufcb_col                                    # (A, 1)
    # fc grads accumulate across the arm loop (only lstm.zero_grad() in torch):
    # cumulative sum over arms via two tiny (A,A) mask+reduce passes (no MXU).
    rows_aa = lax.broadcasted_iota(jnp.int32, (A, A), 0)
    cols_aa = lax.broadcasted_iota(jnp.int32, (A, A), 1)
    fc_row = jnp.sum(jnp.where(rows_aa == cols_aa,
                               jnp.broadcast_to(fc_col, (A, A)), 0.0),
                     axis=0, keepdims=True)                              # (1, A)
    fc_cum_col = jnp.sum(jnp.where(cols_aa <= rows_aa,
                                   jnp.broadcast_to(fc_row, (A, A)), 0.0),
                         axis=1, keepdims=True)                          # (A, 1)

    sigma_col = jnp.sqrt(lambd * (lstm_col + fc_cum_col))
    ucb_col = nu * sigma_col                                             # (A, 1)

    # ---- arm selection (first argmax, like torch.argmax) ----
    scores_col = rewards_col + ucb_col
    arm_f = lax.broadcasted_iota(jnp.int32, (A, 1), 0).astype(jnp.float32)
    max_s = jnp.max(scores_col, axis=0, keepdims=True)
    sel_f = jnp.min(jnp.where(scores_col >= max_s, arm_f, jnp.float32(A)),
                    axis=0, keepdims=True)                               # (1, 1)
    onehot_col = (arm_f == sel_f).astype(jnp.float32)                    # (A, 1)
    lower_mask_col = (arm_f <= sel_f).astype(jnp.float32)                # (A, 1)
    sel_reward = jnp.sum(rewards_col * onehot_col, axis=0, keepdims=True)

    # ---- in-place U += grads[selected_arm]**2 (aliased + donated buffers) ----
    dgsq_sel = jnp.sum(onehot_col * dgates_sq, axis=0, keepdims=True)    # (1, 4H)
    uxh_new_ref[...] = uxh_ref[...] + lax.dot_general(
        xh_sq, dgsq_sel, (((0,), (0,)), ((), ())),
        preferred_element_type=jnp.float32)          # rank-1 outer product (D+H,4H)

    lane_u = lax.broadcasted_iota(jnp.int32, (1, Wu), 1)
    h1sq_pad = _pad_lanes(h1_sq, Wu)                                     # (1, Wu)
    fcb_slot = (lane_u == H).astype(jnp.float32)                         # (1, Wu)
    delta_b = jnp.broadcast_to(_pad_lanes(dgsq_sel, Wu), (2, Wu))        # b_ih & b_hh
    delta_fc = lower_mask_col * (h1sq_pad + fcb_slot)   # accumulated fc_w / fc_b grads
    usmall_new_ref[...] = usmall_ref[...] + jnp.concatenate(
        [delta_b, delta_fc], axis=0)                                     # one dense store

    # ---- pack all small results into one lane-dense slab, single dense store ----
    hc_pad = _pad_lanes(jnp.concatenate([h1, c1], axis=0), Wo)           # rows 0-1
    lane_o = lax.broadcasted_iota(jnp.int32, (1, Wo), 1)
    l0 = (lane_o == 0).astype(jnp.float32)
    l1 = (lane_o == 1).astype(jnp.float32)
    l2 = (lane_o == 2).astype(jnp.float32)
    per_arm = rewards_col * l0 + probs_col * l1 + ucb_col * l2           # rows 2..2+A-1
    sel_row = sel_reward * l0 + sel_f * l1                               # row 2+A
    out_ref[...] = jnp.concatenate([hc_pad, per_arm, sel_row], axis=0)


def _fused_step(state, static, w_xh_t, u_xh, u_small, *, hidden_size, num_arms,
                lambd, nu):
    dph, h4 = w_xh_t.shape
    out_w = _round_up(max(hidden_size, 3), 128)
    vmem = pl.BlockSpec(memory_space=pltpu.MemorySpace.VMEM)
    kernel = functools.partial(_fused_kernel, hidden_size=hidden_size,
                               num_arms=num_arms, lambd=float(lambd),
                               nu=float(nu))
    return pl.pallas_call(
        kernel,
        out_shape=(
            jax.ShapeDtypeStruct((num_arms + 3, out_w), jnp.float32),  # result slab
            jax.ShapeDtypeStruct((dph, h4), jnp.float32),              # U_xh (aliased)
            jax.ShapeDtypeStruct(u_small.shape, jnp.float32),          # U_small (aliased)
        ),
        in_specs=[vmem] * 5,
        out_specs=(vmem, vmem, vmem),
        input_output_aliases={3: 1, 4: 2},
    )(state, static, w_xh_t, u_xh, u_small)


# ----------------------------------------------------------------------------
# Parameter / state helpers
# ----------------------------------------------------------------------------
def init_params(key, input_size, hidden, num_arms):
    d = input_size + 1
    bound = 1.0 / jnp.sqrt(jnp.float32(hidden))          # PyTorch-style uniform init
    ks = jax.random.split(key, 6)

    def u(k, shape):
        return jax.random.uniform(k, shape, jnp.float32, -bound, bound)

    return {
        "w_ih": u(ks[0], (4 * hidden, d)),
        "w_hh": u(ks[1], (4 * hidden, hidden)),
        "b_ih": u(ks[2], (4 * hidden,)),
        "b_hh": u(ks[3], (4 * hidden,)),
        "fc_w": u(ks[4], (num_arms, hidden)),
        "fc_b": u(ks[5], (num_arms,)),
    }


def pack_params(params):
    """Pack weights into kernel layouts.  Call ONCE outside the step loop."""
    h4, _ = params["w_ih"].shape
    h = params["w_hh"].shape[1]
    a = params["fc_w"].shape[0]
    w_xh_t = jnp.concatenate([params["w_ih"].T, params["w_hh"].T], axis=0)  # (D+H,4H)
    wp = _round_up(max(h4, h + 1), 128)
    static = jnp.zeros((1 + a, wp), jnp.float32)
    static = static.at[0, :h4].set(params["b_ih"] + params["b_hh"])
    static = static.at[1:1 + a, :h].set(params["fc_w"])
    static = static.at[1:1 + a, h].set(params["fc_b"])
    return {"w_xh_t": w_xh_t, "static": static}


def init_U(params, lambd=LAMBD):
    """self.U = lambd * ones(total_param), in kernel-friendly aliased layouts."""
    h4, d = params["w_ih"].shape
    h = params["w_hh"].shape[1]
    a = params["fc_w"].shape[0]
    wu = _round_up(max(h4, h + 1), 128)
    return {"xh": lambd * jnp.ones((d + h, h4), jnp.float32),     # w_ih^T ; w_hh^T
            "small": lambd * jnp.ones((2 + a, wu), jnp.float32)}  # b rows, fc_w, fc_b


def flatten_U(U, lstm_in_dim, hidden_size, num_arms):
    """Flatten structured U to PyTorch self.parameters() order
    [w_ih, w_hh, b_ih, b_hh, fc_w, fc_b] (test/reference only)."""
    d, h, a = lstm_in_dim, hidden_size, num_arms
    uxh, us = U["xh"], U["small"]
    u_wih = uxh[:d, :].T.reshape(-1)
    u_whh = uxh[d:, :].T.reshape(-1)
    return jnp.concatenate([u_wih, u_whh, us[0, :4 * h], us[1, :4 * h],
                            us[2:2 + a, :h].reshape(-1), us[2:2 + a, h]])


# ----------------------------------------------------------------------------
# Module-level wrapper (matches LSTMModuleNetwork.forward semantics)
# ----------------------------------------------------------------------------
def lstm_module_forward(packed, U, inp, previous_reward, hidden,
                        *, hidden_size=HIDDEN, num_arms=NUM_ARMS,
                        lambd=LAMBD, nu=NU):
    """Returns ((selected_reward, arm_probs, selected_arm, new_hidden),
    ucb_values, U_new).  `packed` = pack_params(params); U in init_U layout."""
    h0, c0 = hidden                                            # (1,1,H) each
    H, A = hidden_size, num_arms
    dph = packed["w_xh_t"].shape[0]

    x_vec = jnp.concatenate([inp.reshape(-1), previous_reward.reshape(-1)], -1)
    xh = jnp.concatenate([x_vec, h0.reshape(-1)], axis=-1)                # (D+H,)
    ws = _round_up(max(dph, H), 128)
    state = jnp.zeros((2, ws), jnp.float32)                    # per-step state slab
    state = state.at[0, :dph].set(xh)
    state = state.at[1, :H].set(c0.reshape(-1))

    out, u_xh_new, u_small_new = _fused_step(
        state, packed["static"], packed["w_xh_t"], U["xh"], U["small"],
        hidden_size=H, num_arms=A, lambd=lambd, nu=nu)

    h_new = out[0, :H].reshape(1, 1, H)
    c_new = out[1, :H].reshape(1, 1, H)
    arm_probs = out[2:2 + A, 1].reshape(1, A)
    ucb_values = out[2:2 + A, 2]
    selected_reward = out[2 + A, 0].reshape(1, 1)
    selected_arm = out[2 + A, 1].astype(jnp.int32).reshape(1)

    U_new = {"xh": u_xh_new, "small": u_small_new}
    return ((selected_reward, arm_probs, selected_arm, (h_new, c_new)),
            ucb_values, U_new)


# ----------------------------------------------------------------------------
# Pure-JAX (jacrev) replica of the PyTorch module — TEST ONLY, not the hot path.
# ----------------------------------------------------------------------------
def _reference_forward(params, U_flat, inp, previous_reward, hidden, lambd, nu):
    h0, c0 = hidden
    H = params["w_hh"].shape[1]
    A = params["fc_w"].shape[0]
    x_vec = jnp.concatenate([inp, previous_reward.reshape(-1)], axis=-1)
    h0v, c0v = h0.reshape(-1), c0.reshape(-1)

    def fwd(p):
        gates = p["w_ih"] @ x_vec + p["b_ih"] + p["w_hh"] @ h0v + p["b_hh"]
        i = jax.nn.sigmoid(gates[0:H]); f = jax.nn.sigmoid(gates[H:2 * H])
        g = jnp.tanh(gates[2 * H:3 * H]); o = jax.nn.sigmoid(gates[3 * H:4 * H])
        c1 = f * c0v + i * g
        h1 = o * jnp.tanh(c1)
        return p["fc_w"] @ h1 + p["fc_b"], (h1, c1)

    rewards, (h1, c1) = fwd(params)
    probs = jax.nn.softmax(rewards)
    jac = jax.jacrev(lambda p: fwd(p)[0])(params)
    lstm_flat = jnp.concatenate(
        [jac["w_ih"].reshape(A, -1), jac["w_hh"].reshape(A, -1),
         jac["b_ih"].reshape(A, -1), jac["b_hh"].reshape(A, -1)], axis=1)
    fc_flat = jnp.concatenate(
        [jac["fc_w"].reshape(A, -1), jac["fc_b"].reshape(A, -1)], axis=1)
    fc_flat = jnp.cumsum(fc_flat, axis=0)        # fc grads accumulate across arms
    grads = jnp.concatenate([lstm_flat, fc_flat], axis=1)
    sigma = jnp.sqrt(jnp.sum(lambd * grads * grads / U_flat[None, :], axis=1))
    ucb = nu * sigma
    sel = jnp.argmax(rewards + ucb)
    return rewards, probs, ucb, h1, c1, sel, U_flat + grads[sel] ** 2


if __name__ == "__main__":
    key = jax.random.PRNGKey(0)
    pkey, xkey, rkey = jax.random.split(key, 3)

    params = init_params(pkey, INPUT_SIZE, HIDDEN, NUM_ARMS)
    packed = pack_params(params)                 # hoisted out of the step loop
    U = init_U(params, LAMBD)

    inp = jax.random.normal(xkey, (INPUT_SIZE,), jnp.float32)
    previous_reward = jax.random.normal(rkey, (1, 1), jnp.float32)
    hidden = (jnp.zeros((1, 1, HIDDEN), jnp.float32),
              jnp.zeros((1, 1, HIDDEN), jnp.float32))             # init_hidden()

    D = INPUT_SIZE + 1
    # Snapshot U for the reference BEFORE the call: U's buffers are donated.
    U_flat_before = flatten_U(U, D, HIDDEN, NUM_ARMS)

    fwd = jax.jit(lstm_module_forward,
                  static_argnames=("hidden_size", "num_arms", "lambd", "nu"),
                  donate_argnums=(1,))
    outs, ucb_values, U_new = fwd(packed, U, inp, previous_reward, hidden,
                                  hidden_size=HIDDEN, num_arms=NUM_ARMS,
                                  lambd=LAMBD, nu=NU)
    selected_reward, arm_probs, selected_arm, new_hidden = outs
    jax.block_until_ready((selected_reward, arm_probs, selected_arm,
                           new_hidden, ucb_values, U_new))

    # ---- test-only self-check against a jacrev-based pure-JAX replica ----
    r_ref, p_ref, ucb_ref, h_ref, c_ref, sel_ref, U_ref = _reference_forward(
        params, U_flat_before, inp, previous_reward, hidden, LAMBD, NU)

    def maxdiff(a, b):
        return float(jnp.max(jnp.abs(a.reshape(-1) - b.reshape(-1))))

    print("self-check max|diff| (approx 1/U recip -> small ucb drift expected): "
          f"probs={maxdiff(arm_probs, p_ref):.2e} "
          f"ucb={maxdiff(ucb_values, ucb_ref):.2e} "
          f"h={maxdiff(new_hidden[0], h_ref):.2e} "
          f"c={maxdiff(new_hidden[1], c_ref):.2e} "
          f"U={maxdiff(flatten_U(U_new, D, HIDDEN, NUM_ARMS), U_ref):.2e} "
          f"arm_match={int(selected_arm[0]) == int(sel_ref)}")

    print(f"UCB values: {[float(v) for v in ucb_values]}")
    print("KERNEL_OK")
</pallas_src>

<mosaic_0001>
module attributes {stable_mosaic.version = 11 : i64} {
  func.func @_fused_kernel(%arg0: memref<2x128xf32, #tpu.memory_space<vmem>>, %arg1: memref<5x128xf32, #tpu.memory_space<vmem>>, %arg2: memref<41x128xf32, #tpu.memory_space<vmem>>, %arg3: memref<41x128xf32, #tpu.memory_space<vmem>>, %arg4: memref<6x128xf32, #tpu.memory_space<vmem>>, %arg5: memref<7x128xf32, #tpu.memory_space<vmem>>, %arg6: memref<41x128xf32, #tpu.memory_space<vmem>>, %arg7: memref<6x128xf32, #tpu.memory_space<vmem>>) attributes {dimension_semantics = [], scalar_prefetch = 0 : i64, scratch_operands = 0 : i64, tpu.core_type = #tpu.core_type<tc>} {
    %c0 = arith.constant 0 : index
    %c0_0 = arith.constant 0 : index
    %0 = vector.load %arg0[%c0, %c0_0] : memref<2x128xf32, #tpu.memory_space<vmem>>, vector<1x41xf32>
    %c1 = arith.constant 1 : index
    %c0_1 = arith.constant 0 : index
    %1 = vector.load %arg0[%c1, %c0_1] : memref<2x128xf32, #tpu.memory_space<vmem>>, vector<1x32xf32>
    %c0_2 = arith.constant 0 : index
    %c0_3 = arith.constant 0 : index
    %2 = vector.load %arg1[%c0_2, %c0_3] : memref<5x128xf32, #tpu.memory_space<vmem>>, vector<1x128xf32>
    %c1_4 = arith.constant 1 : index
    %c0_5 = arith.constant 0 : index
    %3 = vector.load %arg1[%c1_4, %c0_5] : memref<5x128xf32, #tpu.memory_space<vmem>>, vector<4x32xf32>
    %c1_6 = arith.constant 1 : index
    %c32 = arith.constant 32 : index
    %4 = vector.load %arg1[%c1_6, %c32] : memref<5x128xf32, #tpu.memory_space<vmem>>, vector<4x1xf32>
    %c0_7 = arith.constant 0 : index
    %c0_8 = arith.constant 0 : index
    %5 = vector.load %arg2[%c0_7, %c0_8] : memref<41x128xf32, #tpu.memory_space<vmem>>, vector<41x128xf32>
    %cst = arith.constant dense<0.000000e+00> : vector<1x128xf32>
    %6 = tpu.matmul %0, %5, %cst {dimension_numbers = #tpu.dot_dimension_numbers<[1], [0], [0], [1], [0, 0, 1, 1], [], []>} : vector<1x41xf32>, vector<41x128xf32>, vector<1x128xf32> -> vector<1x128xf32>
    %7 = arith.addf %6, %2 : vector<1x128xf32>
    %8 = arith.negf %7 : vector<1x128xf32>
    %9 = math.exp %8 : vector<1x128xf32>
    %cst_9 = arith.constant 1.000000e+00 : f32
    %10 = vector.broadcast %cst_9 : f32 to vector<1x128xf32>
    %11 = arith.addf %10, %9 : vector<1x128xf32>
    %12 = arith.divf %10, %11 : vector<1x128xf32>
    %13 = math.tanh %7 : vector<1x128xf32>
    %14 = vector.extract_strided_slice %12 {offsets = [0, 0], sizes = [1, 32], strides = [1, 1]} : vector<1x128xf32> to vector<1x32xf32>
    %15 = vector.extract_strided_slice %12 {offsets = [0, 32], sizes = [1, 32], strides = [1, 1]} : vector<1x128xf32> to vector<1x32xf32>
    %16 = vector.extract_strided_slice %13 {offsets = [0, 64], sizes = [1, 32], strides = [1, 1]} : vector<1x128xf32> to vector<1x32xf32>
    %17 = vector.extract_strided_slice %12 {offsets = [0, 96], sizes = [1, 32], strides = [1, 1]} : vector<1x128xf32> to vector<1x32xf32>
    %18 = arith.mulf %15, %1 : vector<1x32xf32>
    %19 = arith.mulf %14, %16 : vector<1x32xf32>
    %20 = arith.addf %18, %19 : vector<1x32xf32>
    %21 = math.tanh %20 : vector<1x32xf32>
    %22 = arith.mulf %17, %21 : vector<1x32xf32>
    %23 = vector.broadcast %22 : vector<1x32xf32> to vector<4x32xf32>
    %24 = arith.mulf %3, %23 : vector<4x32xf32>
    %cst_10 = arith.constant dense<0.000000e+00> : vector<4xf32>
    %25 = vector.multi_reduction <add>, %24, %cst_10 [1] : vector<4x32xf32> to vector<4xf32>
    %26 = vector.shape_cast %25 : vector<4xf32> to vector<4x1xf32>
    %27 = arith.addf %26, %4 : vector<4x1xf32>
    %cst_11 = arith.constant dense<0xFF800000> : vector<1xf32>
    %28 = vector.multi_reduction <maximumf>, %27, %cst_11 [0] : vector<4x1xf32> to vector<1xf32>
    %29 = vector.shape_cast %28 : vector<1xf32> to vector<1x1xf32>
    %30 = vector.broadcast %29 : vector<1x1xf32> to vector<4x1xf32>
    %31 = arith.subf %27, %30 : vector<4x1xf32>
    %32 = math.exp %31 : vector<4x1xf32>
    %cst_12 = arith.constant dense<0.000000e+00> : vector<1xf32>
    %33 = vector.multi_reduction <add>, %32, %cst_12 [0] : vector<4x1xf32> to vector<1xf32>
    %34 = vector.shape_cast %33 : vector<1xf32> to vector<1x1xf32>
    %35 = vector.broadcast %34 : vector<1x1xf32> to vector<4x1xf32>
    %36 = arith.divf %32, %35 : vector<4x1xf32>
    %37 = arith.mulf %21, %21 : vector<1x32xf32>
    %cst_13 = arith.constant 1.000000e+00 : f32
    %38 = vector.broadcast %cst_13 : f32 to vector<1x32xf32>
    %39 = arith.subf %38, %37 : vector<1x32xf32>
    %40 = arith.mulf %17, %39 : vector<1x32xf32>
    %41 = vector.broadcast %40 : vector<1x32xf32> to vector<4x32xf32>
    %42 = arith.mulf %3, %41 : vector<4x32xf32>
    %cst_14 = arith.constant 1.000000e+00 : f32
    %43 = vector.broadcast %cst_14 : f32 to vector<1x32xf32>
    %44 = arith.subf %43, %14 : vector<1x32xf32>
    %45 = arith.mulf %14, %44 : vector<1x32xf32>
    %46 = arith.mulf %16, %45 : vector<1x32xf32>
    %47 = vector.broadcast %46 : vector<1x32xf32> to vector<4x32xf32>
    %48 = arith.mulf %42, %47 : vector<4x32xf32>
    %cst_15 = arith.constant 1.000000e+00 : f32
    %49 = vector.broadcast %cst_15 : f32 to vector<1x32xf32>
    %50 = arith.subf %49, %15 : vector<1x32xf32>
    %51 = arith.mulf %15, %50 : vector<1x32xf32>
    %52 = arith.mulf %1, %51 : vector<1x32xf32>
    %53 = vector.broadcast %52 : vector<1x32xf32> to vector<4x32xf32>
    %54 = arith.mulf %42, %53 : vector<4x32xf32>
    %55 = arith.mulf %16, %16 : vector<1x32xf32>
    %cst_16 = arith.constant 1.000000e+00 : f32
    %56 = vector.broadcast %cst_16 : f32 to vector<1x32xf32>
    %57 = arith.subf %56, %55 : vector<1x32xf32>
    %58 = arith.mulf %14, %57 : vector<1x32xf32>
    %59 = vector.broadcast %58 : vector<1x32xf32> to vector<4x32xf32>
    %60 = arith.mulf %42, %59 : vector<4x32xf32>
    %cst_17 = arith.constant 1.000000e+00 : f32
    %61 = vector.broadcast %cst_17 : f32 to vector<1x32xf32>
    %62 = arith.subf %61, %17 : vector<1x32xf32>
    %63 = arith.mulf %17, %62 : vector<1x32xf32>
    %64 = arith.mulf %21, %63 : vector<1x32xf32>
    %65 = vector.broadcast %64 : vector<1x32xf32> to vector<4x32xf32>
    %66 = arith.mulf %3, %65 : vector<4x32xf32>
    %67 = arith.mulf %48, %48 : vector<4x32xf32>
    %68 = arith.mulf %54, %54 : vector<4x32xf32>
    %69 = arith.mulf %60, %60 : vector<4x32xf32>
    %70 = arith.mulf %66, %66 : vector<4x32xf32>
    %71 = tpu.concatenate %67, %68, %69, %70 in 1 : vector<4x32xf32>, vector<4x32xf32>, vector<4x32xf32>, vector<4x32xf32> -> vector<4x128xf32>
    %c0_18 = arith.constant 0 : index
    %c0_19 = arith.constant 0 : index
    %72 = vector.load %arg3[%c0_18, %c0_19] : memref<41x128xf32, #tpu.memory_space<vmem>>, vector<41x128xf32>
    %73 = tpu.reciprocal %72 {approx = true} : vector<41x128xf32> -> vector<41x128xf32>
    %c0_20 = arith.constant 0 : index
    %c0_21 = arith.constant 0 : index
    %74 = vector.load %arg4[%c0_20, %c0_21] : memref<6x128xf32, #tpu.memory_space<vmem>>, vector<2x128xf32>
    %75 = tpu.reciprocal %74 {approx = true} : vector<2x128xf32> -> vector<2x128xf32>
    %c2 = arith.constant 2 : index
    %c0_22 = arith.constant 0 : index
    %76 = vector.load %arg4[%c2, %c0_22] : memref<6x128xf32, #tpu.memory_space<vmem>>, vector<4x32xf32>
    %77 = tpu.reciprocal %76 {approx = true} : vector<4x32xf32> -> vector<4x32xf32>
    %c2_23 = arith.constant 2 : index
    %c32_24 = arith.constant 32 : index
    %78 = vector.load %arg4[%c2_23, %c32_24] : memref<6x128xf32, #tpu.memory_space<vmem>>, vector<4x1xf32>
    %79 = tpu.reciprocal %78 {approx = true} : vector<4x1xf32> -> vector<4x1xf32>
    %80 = arith.mulf %0, %0 : vector<1x41xf32>
    %cst_25 = arith.constant dense<0.000000e+00> : vector<1x128xf32>
    %81 = tpu.matmul %80, %73, %cst_25 {dimension_numbers = #tpu.dot_dimension_numbers<[1], [0], [0], [1], [0, 0, 1, 1], [], []>} : vector<1x41xf32>, vector<41x128xf32>, vector<1x128xf32> -> vector<1x128xf32>
    %82 = vector.extract_strided_slice %75 {offsets = [0, 0], sizes = [1, 128], strides = [1, 1]} : vector<2x128xf32> to vector<1x128xf32>
    %83 = arith.addf %81, %82 : vector<1x128xf32>
    %84 = vector.extract_strided_slice %75 {offsets = [1, 0], sizes = [1, 128], strides = [1, 1]} : vector<2x128xf32> to vector<1x128xf32>
    %85 = arith.addf %83, %84 : vector<1x128xf32>
    %86 = vector.broadcast %85 : vector<1x128xf32> to vector<4x128xf32>
    %87 = arith.mulf %71, %86 : vector<4x128xf32>
    %cst_26 = arith.constant dense<0.000000e+00> : vector<4xf32>
    %88 = vector.multi_reduction <add>, %87, %cst_26 [1] : vector<4x128xf32> to vector<4xf32>
    %89 = vector.shape_cast %88 : vector<4xf32> to vector<4x1xf32>
    %90 = arith.mulf %22, %22 : vector<1x32xf32>
    %91 = vector.broadcast %90 : vector<1x32xf32> to vector<4x32xf32>
    %92 = arith.mulf %77, %91 : vector<4x32xf32>
    %cst_27 = arith.constant dense<0.000000e+00> : vector<4xf32>
    %93 = vector.multi_reduction <add>, %92, %cst_27 [1] : vector<4x32xf32> to vector<4xf32>
    %94 = vector.shape_cast %93 : vector<4xf32> to vector<4x1xf32>
    %95 = arith.addf %94, %79 : vector<4x1xf32>
    %96 = tpu.iota {dimensions = array<i32: 0>} : vector<4x4xi32>
    %97 = tpu.iota {dimensions = array<i32: 1>} : vector<4x4xi32>
    %98 = arith.cmpi eq, %96, %97 : vector<4x4xi32>
    %99 = vector.shape_cast %95 : vector<4x1xf32> to vector<4x1xf32>
    %100 = vector.broadcast %99 : vector<4x1xf32> to vector<4x4xf32>
    %cst_28 = arith.constant 0.000000e+00 : f32
    %101 = vector.broadcast %cst_28 : f32 to vector<4x4xf32>
    %102 = arith.select %98, %100, %101 : vector<4x4xi1>, vector<4x4xf32>
    %cst_29 = arith.constant dense<0.000000e+00> : vector<4xf32>
    %103 = vector.multi_reduction <add>, %102, %cst_29 [0] : vector<4x4xf32> to vector<4xf32>
    %104 = vector.shape_cast %103 : vector<4xf32> to vector<1x4xf32>
    %105 = arith.cmpi sle, %97, %96 : vector<4x4xi32>
    %106 = vector.shape_cast %104 : vector<1x4xf32> to vector<1x4xf32>
    %107 = vector.broadcast %106 : vector<1x4xf32> to vector<4x4xf32>
    %cst_30 = arith.constant 0.000000e+00 : f32
    %108 = vector.broadcast %cst_30 : f32 to vector<4x4xf32>
    %109 = arith.select %105, %107, %108 : vector<4x4xi1>, vector<4x4xf32>
    %cst_31 = arith.constant dense<0.000000e+00> : vector<4xf32>
    %110 = vector.multi_reduction <add>, %109, %cst_31 [1] : vector<4x4xf32> to vector<4xf32>
    %111 = vector.shape_cast %110 : vector<4xf32> to vector<4x1xf32>
    %112 = arith.addf %89, %111 : vector<4x1xf32>
    %cst_32 = arith.constant 1.000000e+00 : f32
    %113 = vector.broadcast %cst_32 : f32 to vector<4x1xf32>
    %114 = arith.mulf %113, %112 : vector<4x1xf32>
    %115 = math.sqrt %114 : vector<4x1xf32>
    %cst_33 = arith.constant 1.000000e-01 : f32
    %116 = vector.broadcast %cst_33 : f32 to vector<4x1xf32>
    %117 = arith.mulf %116, %115 : vector<4x1xf32>
    %118 = arith.addf %27, %117 : vector<4x1xf32>
    %119 = tpu.iota {dimensions = array<i32: 0>} : vector<4x1xi32>
    %120 = arith.sitofp %119 : vector<4x1xi32> to vector<4x1xf32>
    %cst_34 = arith.constant dense<0xFF800000> : vector<1xf32>
    %121 = vector.multi_reduction <maximumf>, %118, %cst_34 [0] : vector<4x1xf32> to vector<1xf32>
    %122 = vector.shape_cast %121 : vector<1xf32> to vector<1x1xf32>
    %123 = vector.broadcast %122 : vector<1x1xf32> to vector<4x1xf32>
    %124 = arith.cmpf oge, %118, %123 : vector<4x1xf32>
    %cst_35 = arith.constant 4.000000e+00 : f32
    %125 = vector.broadcast %cst_35 : f32 to vector<4x1xf32>
    %126 = arith.select %124, %120, %125 : vector<4x1xi1>, vector<4x1xf32>
    %cst_36 = arith.constant dense<0x7F800000> : vector<1xf32>
    %127 = vector.multi_reduction <minimumf>, %126, %cst_36 [0] : vector<4x1xf32> to vector<1xf32>
    %128 = vector.shape_cast %127 : vector<1xf32> to vector<1x1xf32>
    %129 = vector.broadcast %128 : vector<1x1xf32> to vector<4x1xf32>
    %130 = arith.cmpf oeq, %120, %129 : vector<4x1xf32>
    %131 = arith.extui %130 : vector<4x1xi1> to vector<4x1xi32>
    %132 = arith.sitofp %131 : vector<4x1xi32> to vector<4x1xf32>
    %133 = vector.broadcast %128 : vector<1x1xf32> to vector<4x1xf32>
    %134 = arith.cmpf ole, %120, %133 : vector<4x1xf32>
    %135 = arith.extui %134 : vector<4x1xi1> to vector<4x1xi32>
    %136 = arith.sitofp %135 : vector<4x1xi32> to vector<4x1xf32>
    %137 = arith.mulf %27, %132 : vector<4x1xf32>
    %cst_37 = arith.constant dense<0.000000e+00> : vector<1xf32>
    %138 = vector.multi_reduction <add>, %137, %cst_37 [0] : vector<4x1xf32> to vector<1xf32>
    %139 = vector.shape_cast %138 : vector<1xf32> to vector<1x1xf32>
    %140 = vector.broadcast %132 : vector<4x1xf32> to vector<4x128xf32>
    %141 = arith.mulf %140, %71 : vector<4x128xf32>
    %cst_38 = arith.constant dense<0.000000e+00> : vector<128xf32>
    %142 = vector.multi_reduction <add>, %141, %cst_38 [0] : vector<4x128xf32> to vector<128xf32>
    %143 = vector.shape_cast %142 : vector<128xf32> to vector<1x128xf32>
    %c0_39 = arith.constant 0 : index
    %c0_40 = arith.constant 0 : index
    %144 = vector.load %arg3[%c0_39, %c0_40] : memref<41x128xf32, #tpu.memory_space<vmem>>, vector<41x128xf32>
    %cst_41 = arith.constant dense<0.000000e+00> : vector<41x128xf32>
    %145 = tpu.matmul %80, %143, %cst_41 {dimension_numbers = #tpu.dot_dimension_numbers<[0], [0], [1], [1], [0, 1, 1, 1], [], []>} : vector<1x41xf32>, vector<1x128xf32>, vector<41x128xf32> -> vector<41x128xf32>
    %146 = arith.addf %144, %145 : vector<41x128xf32>
    %c0_42 = arith.constant 0 : index
    %c0_43 = arith.constant 0 : index
    %147 = vector.load %arg6[%c0_42, %c0_43] : memref<41x128xf32, #tpu.memory_space<vmem>>, vector<41x128xf32>
    tpu.vector_store %arg6[%c0_42, %c0_43], %146 {strides = array<i32>} : memref<41x128xf32, #tpu.memory_space<vmem>>, vector<41x128xf32>,
    %148 = tpu.iota {dimensions = array<i32: 1>} : vector<1x128xi32>
    %cst_44 = arith.constant 0.000000e+00 : f32
    %149 = vector.broadcast %cst_44 : f32 to vector<1x96xf32>
    %150 = tpu.concatenate %90, %149 in 1 : vector<1x32xf32>, vector<1x96xf32> -> vector<1x128xf32>
    %c32_i32 = arith.constant 32 : i32
    %151 = vector.broadcast %c32_i32 : i32 to vector<1x128xi32>
    %152 = arith.cmpi eq, %148, %151 : vector<1x128xi32>
    %153 = arith.extui %152 : vector<1x128xi1> to vector<1x128xi32>
    %154 = arith.sitofp %153 : vector<1x128xi32> to vector<1x128xf32>
    %155 = vector.shape_cast %143 : vector<1x128xf32> to vector<1x128xf32>
    %156 = vector.broadcast %155 : vector<1x128xf32> to vector<2x128xf32>
    %157 = arith.addf %150, %154 : vector<1x128xf32>
    %158 = vector.broadcast %136 : vector<4x1xf32> to vector<4x128xf32>
    %159 = vector.broadcast %157 : vector<1x128xf32> to vector<4x128xf32>
    %160 = arith.mulf %158, %159 : vector<4x128xf32>
    %c0_45 = arith.constant 0 : index
    %c0_46 = arith.constant 0 : index
    %161 = vector.load %arg4[%c0_45, %c0_46] : memref<6x128xf32, #tpu.memory_space<vmem>>, vector<6x128xf32>
    %162 = tpu.concatenate %156, %160 in 0 : vector<2x128xf32>, vector<4x128xf32> -> vector<6x128xf32>
    %163 = arith.addf %161, %162 : vector<6x128xf32>
    %c0_47 = arith.constant 0 : index
    %c0_48 = arith.constant 0 : index
    %164 = vector.load %arg7[%c0_47, %c0_48] : memref<6x128xf32, #tpu.memory_space<vmem>>, vector<6x128xf32>
    tpu.vector_store %arg7[%c0_47, %c0_48], %163 {strides = array<i32>} : memref<6x128xf32, #tpu.memory_space<vmem>>, vector<6x128xf32>,
    %165 = tpu.concatenate %22, %20 in 0 : vector<1x32xf32>, vector<1x32xf32> -> vector<2x32xf32>
    %cst_49 = arith.constant 0.000000e+00 : f32
    %166 = vector.broadcast %cst_49 : f32 to vector<2x96xf32>
    %167 = tpu.concatenate %165, %166 in 1 : vector<2x32xf32>, vector<2x96xf32> -> vector<2x128xf32>
    %168 = tpu.iota {dimensions = array<i32: 1>} : vector<1x128xi32>
    %c0_i32 = arith.constant 0 : i32
    %169 = vector.broadcast %c0_i32 : i32 to vector<1x128xi32>
    %170 = arith.cmpi eq, %168, %169 : vector<1x128xi32>
    %171 = arith.extui %170 : vector<1x128xi1> to vector<1x128xi32>
    %172 = arith.sitofp %171 : vector<1x128xi32> to vector<1x128xf32>
    %c1_i32 = arith.constant 1 : i32
    %173 = vector.broadcast %c1_i32 : i32 to vector<1x128xi32>
    %174 = arith.cmpi eq, %168, %173 : vector<1x128xi32>
    %175 = arith.extui %174 : vector<1x128xi1> to vector<1x128xi32>
    %176 = arith.sitofp %175 : vector<1x128xi32> to vector<1x128xf32>
    %c2_i32 = arith.constant 2 : i32
    %177 = vector.broadcast %c2_i32 : i32 to vector<1x128xi32>
    %178 = arith.cmpi eq, %168, %177 : vector<1x128xi32>
    %179 = arith.extui %178 : vector<1x128xi1> to vector<1x128xi32>
    %180 = arith.sitofp %179 : vector<1x128xi32> to vector<1x128xf32>
    %181 = vector.broadcast %27 : vector<4x1xf32> to vector<4x128xf32>
    %182 = vector.broadcast %172 : vector<1x128xf32> to vector<4x128xf32>
    %183 = arith.mulf %181, %182 : vector<4x128xf32>
    %184 = vector.broadcast %36 : vector<4x1xf32> to vector<4x128xf32>
    %185 = vector.broadcast %176 : vector<1x128xf32> to vector<4x128xf32>
    %186 = arith.mulf %184, %185 : vector<4x128xf32>
    %187 = arith.addf %183, %186 : vector<4x128xf32>
    %188 = vector.broadcast %117 : vector<4x1xf32> to vector<4x128xf32>
    %189 = vector.broadcast %180 : vector<1x128xf32> to vector<4x128xf32>
    %190 = arith.mulf %188, %189 : vector<4x128xf32>
    %191 = arith.addf %187, %190 : vector<4x128xf32>
    %192 = vector.broadcast %139 : vector<1x1xf32> to vector<1x128xf32>
    %193 = arith.mulf %192, %172 : vector<1x128xf32>
    %194 = vector.broadcast %128 : vector<1x1xf32> to vector<1x128xf32>
    %195 = arith.mulf %194, %176 : vector<1x128xf32>
    %196 = arith.addf %193, %195 : vector<1x128xf32>
    %197 = tpu.concatenate %167, %191, %196 in 0 : vector<2x128xf32>, vector<4x128xf32>, vector<1x128xf32> -> vector<7x128xf32>
    %c0_50 = arith.constant 0 : index
    %c0_51 = arith.constant 0 : index
    %198 = vector.load %arg5[%c0_50, %c0_51] : memref<7x128xf32, #tpu.memory_space<vmem>>, vector<7x128xf32>
    tpu.vector_store %arg5[%c0_50, %c0_51], %197 {strides = array<i32>} : memref<7x128xf32, #tpu.memory_space<vmem>>, vector<7x128xf32>,
    return
  }
}

</mosaic_0001>

<bundles_post_ra>
// kernel: lstm_module_forward.1
= control target key start
LH: loop header
LB: loop body
LE: loop exit
PB: predicated region body
PF: predicated region fallthrough
CT: control target
= control target key end

     0   :  { %13 = vsyncpa [#allocation3], 0  ;;  %s1092_s0 = inlined_call_operand.vmem [shape: f32[2,128], index: 0, kind: input, shape index: {}]   ;;  %s1093_s1 = inlined_call_operand.hbm [shape: f32[5,128], index: 1, kind: input, shape index: {}]   ;;  %s1094_s2 = inlined_call_operand.hbm [shape: f32[41,128], index: 2, kind: input, shape index: {}]   ;;  %s1095_s3 = inlined_call_operand.hbm [shape: f32[41,128], index: 3, kind: input, shape index: {}, may-alias: {3,6}]   ;;  %s1096_s4 = inlined_call_operand.hbm [shape: f32[6,128], index: 4, kind: input, shape index: {}, may-alias: {4,7}]   ;;  %s1097_s5 = inlined_call_operand.vmem [shape: f32[7,128], index: 5, kind: output, shape index: {0}]   ;;  %s1098_s6 = inlined_call_operand.hbm [shape: f32[41,128], index: 6, kind: output, shape index: {1}, may-alias: {3,6}]   ;;  %s1099_s7 = inlined_call_operand.hbm [shape: f32[6,128], index: 7, kind: output, shape index: {2}, may-alias: {4,7}]  }
   0x1   :  { %14 = vsyncpa [#allocation6], 0 }
   0x2   :  { %15 = vsyncpa [#allocation9], 0 }
   0x3   :  { %16 = vsyncpa [#allocation4], 0  ;;  %s35_s26 = sshll.u32 %s1094_s2, 4  ;;  %s36_s26 = int_to_ptr.hbm [resolvable:$true] %s35_s26 }
   0x4   :  { %17 = vsyncpa [#allocation12], 0  ;;  %s864_s27 = smov [#allocation5]   ;;  %s25_s8 = sshll.u32 %s1093_s1, 4  ;;  %s26_s8 = int_to_ptr.hbm [resolvable:$true] %s25_s8 }
   0x5   :  { %s37_s28 = sshll.u32 %s864_s27, 4  ;;  %s865_s9 = smov 128   ;;  %s38_s28 = int_to_ptr.vmem [resolvable:$true] %s37_s28 }
   0x6   :  { %s866_s10 = smov 8   ;;  %s867_s11 = smov [#allocation2]  }
   0x7   :  { %43 = dma.hbm_to_vmem [thread:$0]  %s36_s26, 768, %s38_s28, [#allocation6], %s865_s9, %s865_s9, %s866_s10  }
   0x8   :  { %s27_s12 = sshll.u32 %s867_s11, 4  ;;  %s48_s14 = sshll.u32 %s1095_s3, 4  ;;  %s28_s12 = int_to_ptr.vmem [resolvable:$true] %s27_s12  ;;  %s49_s14 = int_to_ptr.hbm [resolvable:$true] %s48_s14 }
   0x9   :  { %30 = dma.hbm_to_vmem [thread:$0]  %s26_s8, 128, %s28_s12, [#allocation3]  }
   0xa   :  { %s62_s1 = sshll.u32 %s1096_s4, 4  ;;  %s868_s17 = smov [#allocation7]   ;;  %s63_s1 = int_to_ptr.hbm [resolvable:$true] %s62_s1 }
   0xb   :  { %s50_s18 = sshll.u32 %s868_s17, 4  ;;  %s869_s19 = smov [#allocation8]   ;;  %s51_s18 = int_to_ptr.vmem [resolvable:$true] %s50_s18 }
   0xc   :  { %56 = dma.hbm_to_vmem [thread:$0]  %s49_s14, 768, %s51_s18, [#allocation6], %s865_s9, %s865_s9, %s866_s10  }
   0xd   :  { %s64_s20 = sshll.u32 %s869_s19, 4  ;;  %s65_s20 = int_to_ptr.vmem [resolvable:$true] %s64_s20 }
   0xe   :  { %67 = dma.hbm_to_vmem [thread:$0]  %s63_s1, 128, %s65_s20, [#allocation9]  }
   0xf   :  { %854 = dma.done.wait [#allocation3], 128  }
  0x10   :  { %855 = vsyncadd [#allocation3], 4294967168 }
  0x11   :  { %856 = dma.done.wait [#allocation6], 1536  }
  0x12   :  { %857 = vsyncadd [#allocation6], 4294965760 }
  0x13   :  { %858 = dma.done.wait [#allocation9], 128  }
  0x14   :  { %859 = vsyncadd [#allocation9], 4294967168  ;;  %vm98_vm0 = vcmask 1040384   ;;  %v93_v0 = vld [vmem:[#allocation5 + $0x28] sm:$0x1]  ;;  %v92_v1 = vld [vmem:[#allocation5 + $0x20] sm:$0xff] }
  0x15   :  { %645 = vmatpush.msk.msra.mxu0 %vm98_vm0, %v93_v0  ;;  %v91_v2 = vld [vmem:[#allocation5 + $0x18] sm:$0xff]  ;;  %v90_v3 = vld [vmem:[#allocation5 + $0x10] sm:$0xff]  ;;  %v89_v4 = vld [vmem:[#allocation5 + $0x8] sm:$0xff]  ;;  %vm94_vm1 = vcmask 334848   ;;  %s870_s21 = smov 64   ;;  %s871_s24 = smov 32  }
  0x16   :  { %v88_v5 = vld [vmem:[#allocation5] sm:$0xff]  ;;  %v939_v6 = vld [vmem:[%s1092_s0] sm:$0x1]  ;;  %v947_v14 = vld [vmem:[%s1092_s0 + $0x1] sm:$0x1]  ;;  %s872_s0 = smov 96  }
  0x17   :  { %113 = vmatpush.msra.mxu0 %v92_v1  ;;  %v86_v7 = vld [vmem:[#allocation2] sm:$0x1]  ;;  %v979_v48 = vld [vmem:[#allocation7 + $0x20] sm:$0xff]  ;;  %v981_v49 = vld [vmem:[#allocation7 + $0x18] sm:$0xff]  ;;  %vm169_vm6 = vcmask 257024   ;;  %v998_v63 = vmul.f32 %v939_v6, %v939_v6  ;;  %vm352_vm8 = vcmask 27648  }
  0x18   :  { %v977_v47 = vld [vmem:[#allocation7 + $0x28] sm:$0x1]  ;;  %v291_v50 = vld [vmem:[#allocation8 + $0x2] sm:$0xf]  ;;  %v991_v53 = vld [vmem:[#allocation7] sm:$0xff]  ;;  %vm271_vm9 = vcmask 261120  }
  0x19   :  { %114 = vmatpush.msra.mxu0 %v91_v2  ;;  %v985_v51 = vld [vmem:[#allocation7 + $0x10] sm:$0xff]  ;;  %v988_v52 = vld [vmem:[#allocation7 + $0x8] sm:$0xff]  ;;  %vm273_vm11 = vcmask 523264   ;;  %vm275_vm12 = vcmask 785408   ;;  %vm326_vm13 = vcmask 1043456   ;;  %vm174_vm14 = vcmask 265472  }
  0x1a   :  { %s875_s25 = smov [#allocation11]   ;;  %s626_s29 = sshll.u32 %s1099_s7, 4  ;;  %s627_s29 = int_to_ptr.hbm [resolvable:$true] %s626_s29 }
  0x1b   :  { %115 = vmatpush.msra.mxu0 %v90_v3  ;;  %s624_s26 = sshll.u32 %s875_s25, 4  ;;  %s612_s13 = sshll.u32 %s1098_s6, 4  ;;  %s625_s26 = int_to_ptr.vmem [resolvable:$true] %s624_s26  ;;  %s613_s13 = int_to_ptr.hbm [resolvable:$true] %s612_s13 }
  0x1d   :  { %116 = vmatpush.msra.mxu0 %v89_v4  ;;  %v873_v4 = vmov 32  }
  0x1e   :  { %677 = vset.pattern.permute.xlu2 %v873_v4  ;;  %678 = vset.pattern.permute.xlu1 %v873_v4 }
  0x1f   :  { %117 = vmatpush.msra.mxu0 %v88_v5  ;;  %679 = vset.pattern.permute.xlu0 %v873_v4 }
  0x20   :  { %646 = vmatmul.msk.f32.vlgmr.msra.gmra.mxu0 %vm94_vm1, %v939_v6 }
  0x9d   :  { %v119_v8 = vpop.f32.mrf.mxu0 }
  0x9e   :  { %v120_v9 = vadd.f32 %v119_v8, %v86_v7  ;;  %v1006_v8 = vld [vmem:[#allocation2 + $0x1] sm:$0xf] }
  0xa0   :  { %v647_v10 = vmul.f32 -1.442695, %v120_v9  ;;  %680 = vtanh.f32 %v120_v9 }
  0xa2   :  { %682 = vpow2.f32 %v647_v10 }
  0xa6   :  { %v681_v11 = vpop.eup %680 }
  0xa7   :  { %148 = vrot.lane.b32.xlu0 %v681_v11, %s870_s21  ;;  %v239_v27 = vmul.f32 %v681_v11, %v681_v11 }
  0xa8   :  { %v683_v12 = vpop.eup %682 }
  0xa9   :  { %v125_v13 = vadd.f32 1.0, %v683_v12  ;;  %v240_v28 = vsub.f32 1.0, %v239_v27  ;;  %v289_v27 = vld [vmem:[#allocation8] sm:$0x3] }
  0xab   :  { %684 = vrcp.f32 %v125_v13  ;;  %v137_v18 = vand.u32 2147483648, %v125_v13  ;;  %v135_v20 = vand.u32 2147483647, %v125_v13  ;;  %vm131_vm3 = vweird.f32 %v125_v13 }
  0xad   :  { %v138_v22 = vor.u32 1.1754944e-38, %v137_v18  ;;  %vm136_vm5 = vcmp.eq.f32.partialorder %v135_v20, 8.507059e+37 }
  0xaf   :  { %143 = vrot.lane.b32.xlu0 %v947_v14, %s871_s24 }
  0xb1   :  { %v685_v15 = vpop.eup %684 }
  0xb2   :  { %v127_v16 = vmul.f32 %v685_v15, %v125_v13  ;;  %vm132_vm2 = vweird.f32 %v685_v15 }
  0xb3   :  { %vm133_vm4 = vmor %vm131_vm3, %vm132_vm2 }
  0xb4   :  { %v128_v17 = vsub.f32 1.0, %v127_v16 }
  0xb6   :  { %v129_v19 = vmul.f32 %v685_v15, %v128_v17 }
  0xb8   :  { %v130_v21 = vadd.f32 %v685_v15, %v129_v19 }
  0xba   :  { %v134_v23 = vsel %vm133_vm4, %v685_v15, %v130_v21 }
  0xbb   :  { %v951_v24 = vsel %vm136_vm5, %v138_v22, %v134_v23 }
  0xbc   :  { %v220_v25 = vsub.f32 1.0, %v951_v24 }
  0xbe   :  { %v221_v26 = vmul.f32 %v220_v25, %v951_v24  ;;  %v341_v25 = vlaneseq }
  0xc0   :  { %223 = vrot.lane.b32.xlu0 %v221_v26, %s870_s21 }
  0xc8   :  { %242 = vrot.lane.b32.xlu0 %v240_v28, %s870_s21 }
 0x119   :  { %v149_v29 = vpop.permute.xlu0 %148 }
 0x11a   :  { %v151_v30 = vmul.f32 %v149_v29, %v951_v24 }
 0x11c   :  { %153 = vrot.lane.b32.xlu1 %v151_v30, %s871_s24 }
 0x121   :  { %v144_v31 = vpop.permute.xlu0 %143 }
 0x122   :  { %v146_v32 = vmul.f32 %v144_v31, %v951_v24 }
 0x132   :  { %v224_v36 = vpop.permute.xlu0 %223 }
 0x133   :  { %v226_v39 = vmul.f32 %v681_v11, %v224_v36 }
 0x135   :  { %v227_v40 = vperm.slane %v226_v39, 0 }
 0x13a   :  { %v243_v6 = vpop.permute.xlu0 %242 }
 0x13b   :  { %v245_v7 = vmul.f32 %v243_v6, %v951_v24 }
 0x13d   :  { %v246_v10 = vperm.slane %v245_v7, 0 }
 0x18e   :  { %v154_v33 = vpop.permute.xlu1 %153 }
 0x18f   :  { %v960_v34 = vadd.f32 %v154_v33, %v146_v32 }
 0x191   :  { %686 = vtanh.f32 %v960_v34 }
 0x192   :  { %688 = vrcp.f32 %v977_v47 }
 0x193   :  { %690 = vrcp.f32 %v979_v48 }
 0x194   :  { %692 = vrcp.f32 %v981_v49 }
 0x195   :  { %694 = vrcp.f32 %v291_v50 }
 0x196   :  { %696 = vrcp.f32 %v985_v51 }
 0x197   :  { %v687_v35 = vpop.eup %686  ;;  %698 = vrcp.f32 %v988_v52 }
 0x198   :  { %159 = vrot.lane.b32.xlu1 %v687_v35, %s870_s21  ;;  %v248_v37 = vmul.f32 %v687_v35, %v224_v36  ;;  %v207_v45 = vmul.f32 %v687_v35, %v687_v35  ;;  %v689_v54 = vpop.eup %688  ;;  %700 = vrcp.f32 %v991_v53 }
 0x199   :  { %v691_v55 = vpop.eup %690  ;;  %648 = vmatpush.msk.msra.mxu1 %vm98_vm0, %v689_v54  ;;  %702 = vrcp.f32 %v289_v27 }
 0x19a   :  { %v249_v38 = vperm.slane %v248_v37, 0  ;;  %v208_v46 = vsub.f32 1.0, %v207_v45  ;;  %v693_v56 = vpop.eup %692 }
 0x19b   :  { %v695_v57 = vpop.eup %694  ;;  %311 = vmatpush.msra.mxu1 %v691_v55 }
 0x19c   :  { %251 = vrot.lane.b32.xlu0 %v249_v38, %s872_s0  ;;  %v697_v58 = vpop.eup %696 }
 0x19d   :  { %312 = vmatpush.msra.mxu1 %v693_v56  ;;  %v699_v59 = vpop.eup %698 }
 0x19e   :  { %v701_v62 = vpop.eup %700 }
 0x19f   :  { %313 = vmatpush.msra.mxu1 %v697_v58  ;;  %v703_v31 = vpop.eup %702 }
 0x1a0   :  { %v321_v38 = vrot.slane %v703_v31, 1 }
 0x1a1   :  { %314 = vmatpush.msra.mxu1 %v699_v59 }
 0x1a3   :  { %315 = vmatpush.msra.mxu1 %v701_v62 }
 0x1a4   :  { %229 = vrot.lane.b32.xlu0 %v227_v40, %s870_s21  ;;  %649 = vmatmul.msk.f32.vlgmr.msra.gmra.mxu1 %vm94_vm1, %v998_v63 }
 0x20a   :  { %v160_v41 = vpop.permute.xlu1 %159 }
 0x20b   :  { %v967_v42 = vmul.f32 %v160_v41, %v951_v24 }
 0x20d   :  { %v971_v43 = vmul.f32 %v967_v42, %v967_v42  ;;  %v163_v15 = vperm.slane %v967_v42, 0 }
 0x20e   :  { %v252_v22 = vpop.permute.xlu0 %251 }
 0x20f   :  { %v331_v44 = vperm.slane %v971_v43, 0  ;;  %v254_v23 = vmul.f32 %v252_v22, %v1006_v8 }
 0x211   :  { %333 = vrot.lane.b32.xlu2 %v331_v44, %s871_s24 }
 0x216   :  { %v230_v35 = vpop.permute.xlu0 %229 }
 0x219   :  { %210 = vrot.lane.b32.xlu2 %v208_v46, %s870_s21 }
 0x221   :  { %233 = vrot.lane.b32.xlu2 %v221_v26, %s872_s0  ;;  %v1016_v26 = vshrl.u32 %v341_v25, 7  ;;  %v317_v33 = vpop.f32.mrf.mxu1 }
 0x222   :  { %v318_v37 = vadd.f32 %v703_v31, %v317_v33 }
 0x224   :  { %v323_v45 = vadd.f32 %v321_v38, %v318_v37 }
 0x226   :  { %v324_v56 = vperm.slane %v323_v45, 0 }
 0x26b   :  { %v334_v60 = vpop.permute.xlu2 %333 }
 0x26c   :  { %v336_v61 = vmul.f32 %v695_v57, %v334_v60 }
 0x26e   :  { %v337_v0 = vsel %vm169_vm6, %v336_v61, 0.0 }
 0x26f   :  { %338 = vadd.xlane.f32.xlu1 %v337_v0 }
 0x273   :  { %v211_v1 = vpop.permute.xlu2 %210 }
 0x274   :  { %v213_v2 = vmul.f32 %v211_v1, %v951_v24  ;;  %v258_v24 = vmul.f32 %v254_v23, %v254_v23 }
 0x276   :  { %v214_v3 = vperm.slane %v213_v2, 0 }
 0x278   :  { %216 = vrot.lane.b32.xlu2 %v214_v3, %s871_s24 }
 0x27b   :  { %v234_v5 = vpop.permute.xlu2 %233 }
 0x27c   :  { %v236_v16 = vmul.f32 %v234_v5, %v947_v14  ;;  %v1018_v14 = vand.u32 127, %v341_v25  ;;  %v550_v5 = vrot.slane %v960_v34, 7 }
 0x27e   :  { %v237_v19 = vperm.slane %v236_v16, 0  ;;  %vm345_vm7 = vcmp.eq.s32.totalorder %v1016_v26, %v1018_v14  ;;  %vm360_vm10 = vcmp.le.s32.totalorder %v1018_v14, %v1016_v26 }
 0x2d2   :  { %v217_v9 = vpop.permute.xlu2 %216 }
 0x2d3   :  { %v219_v11 = vmul.f32 %v217_v9, %v1006_v8 }
 0x2d5   :  { %v247_v12 = vmul.f32 %v246_v10, %v219_v11  ;;  %v238_v20 = vmul.f32 %v237_v19, %v219_v11  ;;  %v232_v41 = vmul.f32 %v230_v35, %v219_v11 }
 0x2d7   :  { %v257_v13 = vmul.f32 %v247_v12, %v247_v12  ;;  %v256_v21 = vmul.f32 %v238_v20, %v238_v20  ;;  %v255_v54 = vmul.f32 %v232_v41, %v232_v41 }
 0x2d9   :  { %264 = vrot.lane.b32.xlu0 %v257_v13, %s870_s21 }
 0x2e1   :  { %165 = vrot.lane.b32.xlu0 %v163_v15, %s871_s24 }
 0x2e2   :  { %v339_v17 = vpop.xlane.xlu1 %338 }
 0x2e3   :  { %v340_v18 = vadd.f32 %v695_v57, %v339_v17 }
 0x2e5   :  { %348 = vperm.xlu2 %677, %v340_v18  }
 0x2ed   :  { %260 = vrot.lane.b32.xlu2 %v256_v21, %s871_s24 }
 0x2f5   :  { %268 = vrot.lane.b32.xlu2 %v258_v24, %s872_s0 }
 0x33f   :  { %v349_v28 = vpop.permute.xlu2 %348 }
 0x340   :  { %v351_v29 = vsel %vm345_vm7, %v349_v28, 0.0 }
 0x341   :  { %v353_v30 = vsel %vm352_vm8, %v351_v29, 0.0 }
 0x342   :  { %v354_v32 = vrot.slane %v353_v30, 4 }
 0x344   :  { %v355_v36 = vadd.f32 %v354_v32, %v353_v30 }
 0x346   :  { %v356_v39 = vrot.slane %v355_v36, 2 }
 0x347   :  { %v261_v40 = vpop.permute.xlu2 %260 }
 0x348   :  { %v357_v44 = vadd.f32 %v356_v39, %v355_v36  ;;  %v272_v57 = vsel %vm271_vm9, %v255_v54, %v261_v40  ;;  %v380_v54 = vcvt.s32.f32 %v1016_v26 }
 0x34a   :  { %v358_v46 = vrot.slane %v357_v44, 1 }
 0x34b   :  { %v265_v50 = vpop.permute.xlu0 %264 }
 0x34c   :  { %v359_v55 = vadd.f32 %v358_v46, %v357_v44  ;;  %v274_v59 = vsel %vm273_vm11, %v272_v57, %v265_v50  ;;  %vm560_vm11 = vcmp.eq.s32.totalorder %v1018_v14, 0 }
 0x34e   :  { %v361_v58 = vsel %vm360_vm10, %v359_v55, 0.0  ;;  %vm530_vm10 = vcmp.eq.s32.totalorder %v1018_v14, 32 }
 0x34f   :  { %v269_v60 = vpop.permute.xlu2 %268  ;;  %v362_v61 = vsel %vm352_vm8, %v361_v58, 0.0 }
 0x350   :  { %v1027_v62 = vsel %vm275_vm12, %v274_v59, %v269_v60  ;;  %363 = vadd.xlane.f32.xlu1 %v362_v61  ;;  %vm563_vm12 = vcmp.eq.s32.totalorder %v1018_v14, 1 }
 0x351   :  { %v325_v0 = vmul.f32 %v324_v56, %v1027_v62 }
 0x353   :  { %v166_v1 = vpop.permute.xlu0 %165  ;;  %v327_v2 = vsel %vm326_vm13, %v325_v0, 0.0 }
 0x354   :  { %v168_v3 = vmul.f32 %v166_v1, %v1006_v8  ;;  %328 = vadd.xlane.f32.xlu2 %v327_v2 }
 0x356   :  { %v170_v4 = vsel %vm169_vm6, %v168_v3, 0.0 }
 0x357   :  { %171 = vadd.xlane.f32.xlu0 %v170_v4 }
 0x36b   :  { %551 = vrot.lane.b32.xlu0 %v550_v5, %s870_s21 }
 0x36c   :  { %526 = vrot.lane.b32.xlu2 %v971_v43, %s871_s24 }
 0x3c3   :  { %v364_v6 = vpop.xlane.xlu1 %363 }
 0x3c7   :  { %v329_v7 = vpop.xlane.xlu2 %328 }
 0x3c8   :  { %v365_v9 = vadd.f32 %v364_v6, %v329_v7 }
 0x3ca   :  { %704 = vrsqrt.f32 %v365_v9  ;;  %v172_v10 = vpop.xlane.xlu0 %171  ;;  %vm373_vm15 = vcmp.eq.f32.partialorder %v365_v9, inf  ;;  %v376_v25 = vand.u32 2147483648, %v365_v9  ;;  %vm375_vm1 = vcmp.eq.f32.partialorder %v365_v9, 0.0 }
 0x3cb   :  { %v1038_v11 = vadd.f32 %v172_v10, %v1006_v8 }
 0x3cd   :  { %v175_v12 = vsel %vm174_vm14, %v1038_v11, -inf  ;;  %571 = vperm.xlu2 %677, %v1038_v11  }
 0x3ce   :  { %v176_v34 = vrot.slane %v175_v12, 4 }
 0x3d0   :  { %v705_v13 = vpop.eup %704  ;;  %v177_v15 = vmax.f32 %v175_v12, %v176_v34  ;;  %v874_v12 = vmov 0.0  }
 0x3d1   :  { %v367_v16 = vmul.f32 %v705_v13, %v365_v9 }
 0x3d2   :  { %v178_v17 = vrot.slane %v177_v15, 2 }
 0x3d3   :  { %v368_v43 = vmul.f32 %v705_v13, %v367_v16 }
 0x3d4   :  { %v179_v18 = vmax.f32 %v177_v15, %v178_v17 }
 0x3d5   :  { %v369_v19 = vmul.f32 0.5, %v368_v43 }
 0x3d6   :  { %v180_v20 = vrot.slane %v179_v18, 1 }
 0x3d7   :  { %v370_v21 = vsub.f32 1.5, %v369_v19 }
 0x3d8   :  { %v181_v22 = vmax.f32 %v179_v18, %v180_v20 }
 0x3d9   :  { %v371_v23 = vmul.f32 %v705_v13, %v370_v21 }
 0x3da   :  { %v182_v8 = vsub.f32 %v1038_v11, %v181_v22 }
 0x3db   :  { %v372_v24 = vmul.f32 %v371_v23, %v365_v9 }
 0x3dc   :  { %v183_v27 = vmul.f32 1.442695, %v182_v8 }
 0x3dd   :  { %v374_v28 = vsel %vm373_vm15, %v365_v9, %v372_v24  ;;  %v552_v29 = vpop.permute.xlu0 %551  ;;  %vm545_vm15 = vcmask 1041408  }
 0x3de   :  { %v377_v30 = vsel %vm375_vm1, %v376_v25, %v374_v28  ;;  %v554_v31 = vsel %vm98_vm0, %v967_v42, %v552_v29  ;;  %706 = vpow2.f32 %v183_v27  ;;  %v527_v25 = vpop.permute.xlu2 %526  ;;  %v659_v29 = vsel %vm530_vm10, 1.0, %v874_v12 }
 0x3df   :  { %v1046_v32 = vmul.f32 0.1, %v377_v30  ;;  %556 = vrot.lane.b32.xlu0 %v554_v31, %s871_s24  ;;  %v529_v30 = vsel %vm271_vm9, %v527_v25, 0.0 }
 0x3e1   :  { %v379_v33 = vadd.f32 %v1046_v32, %v1038_v11 }
 0x3e3   :  { %v381_v35 = vsel %vm174_vm14, %v379_v33, -inf }
 0x3e4   :  { %v707_v36 = vpop.eup %706  ;;  %v382_v37 = vrot.slane %v381_v35, 4 }
 0x3e5   :  { %v185_v38 = vsel %vm174_vm14, %v707_v36, 0.0 }
 0x3e6   :  { %v383_v39 = vmax.f32 %v381_v35, %v382_v37  ;;  %v186_v40 = vrot.slane %v185_v38, 4  ;;  %v661_v35 = vsel %vm563_vm12, 1.0, %v874_v12 }
 0x3e8   :  { %v384_v41 = vrot.slane %v383_v39, 2  ;;  %v187_v44 = vadd.f32 %v186_v40, %v185_v38 }
 0x3ea   :  { %v385_v45 = vmax.f32 %v383_v39, %v384_v41  ;;  %v188_v42 = vrot.slane %v187_v44, 2 }
 0x3ec   :  { %v386_v46 = vrot.slane %v385_v45, 1  ;;  %v189_v50 = vadd.f32 %v188_v42, %v187_v44 }
 0x3ee   :  { %v387_v55 = vmax.f32 %v385_v45, %v386_v46  ;;  %v190_v56 = vrot.slane %v189_v50, 1 }
 0x3f0   :  { %vm388_vm2 = vcmp.ge.f32.partialorder %v379_v33, %v387_v55  ;;  %v191_v57 = vadd.f32 %v190_v56, %v189_v50  ;;  %v660_v33 = vsel %vm560_vm11, 1.0, %v874_v12 }
 0x3f1   :  { %v389_v58 = vsel %vm388_vm2, %v380_v54, 4.0 }
 0x3f2   :  { %v390_v59 = vsel %vm174_vm14, %v389_v58, inf  ;;  %708 = vrcp.f32 %v191_v57  ;;  %v203_v6 = vand.u32 2147483648, %v191_v57  ;;  %v201_v9 = vand.u32 2147483647, %v191_v57 }
 0x3f3   :  { %v391_v60 = vrot.slane %v390_v59, 4  ;;  %vm197_vm6 = vweird.f32 %v191_v57 }
 0x3f4   :  { %v204_v15 = vor.u32 1.1754944e-38, %v203_v6  ;;  %vm202_vm8 = vcmp.eq.f32.partialorder %v201_v9, 8.507059e+37 }
 0x3f5   :  { %v392_v61 = vmin.f32 %v390_v59, %v391_v60 }
 0x3f7   :  { %v393_v0 = vrot.slane %v392_v61, 2 }
 0x3f8   :  { %v709_v1 = vpop.eup %708 }
 0x3f9   :  { %v394_v2 = vmin.f32 %v392_v61, %v393_v0  ;;  %v193_v3 = vmul.f32 %v709_v1, %v191_v57  ;;  %vm198_vm3 = vweird.f32 %v709_v1  ;;  %v541_v0 = vld [vmem:[#allocation8] sm:$0x3f] }
 0x3fa   :  { %vm199_vm7 = vmor %vm197_vm6, %vm198_vm3 }
 0x3fb   :  { %v395_v4 = vrot.slane %v394_v2, 1  ;;  %v194_v5 = vsub.f32 1.0, %v193_v3 }
 0x3fd   :  { %v1055_v7 = vmin.f32 %v394_v2, %v395_v4  ;;  %v195_v26 = vmul.f32 %v709_v1, %v194_v5 }
 0x3ff   :  { %vm400_vm4 = vcmp.le.f32.partialorder %v380_v54, %v1055_v7  ;;  %vm397_vm5 = vcmp.eq.f32.partialorder %v380_v54, %v1055_v7  ;;  %v196_v10 = vadd.f32 %v709_v1, %v195_v26 }
 0x400   :  { %v651_v34 = vsel %vm400_vm4, 1.0, %v874_v12  ;;  %v650_v13 = vsel %vm397_vm5, 1.0, %v874_v12 }
 0x401   :  { %536 = vperm.xlu2 %677, %v651_v34   ;;  %413 = vperm.xlu1 %678, %v650_v13   ;;  %v403_v16 = vmul.f32 %v650_v13, %v1038_v11  ;;  %v200_v17 = vsel %vm199_vm7, %v709_v1, %v196_v10 }
 0x402   :  { %v205_v43 = vsel %vm202_vm8, %v204_v15, %v200_v17 }
 0x403   :  { %v404_v18 = vsel %vm174_vm14, %v403_v16, 0.0  ;;  %v206_v19 = vmul.f32 %v707_v36, %v205_v43  ;;  %vm566_vm14 = vcmp.eq.s32.totalorder %v1018_v14, 2  ;;  %v533_v36 = vadd.f32 %v659_v29, %v529_v30 }
 0x404   :  { %v405_v20 = vrot.slane %v404_v18, 4  ;;  %v662_v38 = vsel %vm566_vm14, 1.0, %v874_v12 }
 0x405   :  { %577 = vperm.xlu0 %679, %v206_v19   ;;  %v582_v46 = vmul.f32 %v662_v38, %v1046_v32  ;;  %v539_v50 = vperm.slane %v533_v36, 0 }
 0x406   :  { %v406_v21 = vadd.f32 %v405_v20, %v404_v18 }
 0x408   :  { %v407_v22 = vrot.slane %v406_v21, 2 }
 0x40a   :  { %v408_v23 = vadd.f32 %v407_v22, %v406_v21 }
 0x40c   :  { %v409_v8 = vrot.slane %v408_v23, 1 }
 0x40e   :  { %v410_v24 = vadd.f32 %v409_v8, %v408_v23 }
 0x410   :  { %586 = vperm.xlu2 %677, %v410_v24  }
 0x427   :  { %v572_v11 = vpop.permute.xlu2 %571 }
 0x428   :  { %v574_v40 = vmul.f32 %v660_v33, %v572_v11 }
 0x436   :  { %424 = vxpose.xlu1.b32.start.end [1/1] (short) (narrow) %v998_v63, 48 }
 0x451   :  { %v557_v27 = vpop.permute.xlu0 %556 }
 0x452   :  { %v559_v57 = vsel %vm271_vm9, %v557_v27, 0.0 }
 0x45b   :  { %v537_v45 = vpop.permute.xlu2 %536 }
 0x45c   :  { %v540_v55 = vmul.f32 %v539_v50, %v537_v45 }
 0x45e   :  { %v543_v60 = vrot.slane %v540_v55, 6 }
 0x473   :  { %v414_v28 = vpop.permute.xlu1 %413 }
 0x474   :  { %v416_v31 = vmul.f32 %v414_v28, %v1027_v62 }
 0x476   :  { %v417_v63 = vsel %vm326_vm13, %v416_v31, 0.0  ;;  %vm456_vm13 = vcmask 7168  }
 0x477   :  { %v418_v37 = vrot.slane %v417_v63, 4  ;;  %v578_v39 = vpop.permute.xlu0 %577 }
 0x478   :  { %v580_v41 = vmul.f32 %v661_v35, %v578_v39 }
 0x479   :  { %v419_v44 = vadd.f32 %v418_v37, %v417_v63 }
 0x47a   :  { %v581_v42 = vadd.f32 %v580_v41, %v574_v40 }
 0x47b   :  { %v420_v54 = vrot.slane %v419_v44, 2 }
 0x47c   :  { %v583_v62 = vadd.f32 %v582_v46, %v581_v42 }
 0x47d   :  { %v421_v14 = vadd.f32 %v420_v54, %v419_v44 }
 0x47e   :  { %v598_v56 = vrot.slane %v583_v62, 6 }
 0x47f   :  { %v422_v58 = vrot.slane %v421_v14, 1 }
 0x480   :  { %v600_v59 = vsel %vm545_vm15, %v559_v57, %v598_v56 }
 0x481   :  { %v423_v61 = vadd.f32 %v422_v58, %v421_v14 }
 0x483   :  { %652 = vmatpush.msk.msra.mxu2 %vm98_vm0, %v423_v61  ;;  %663 = vmatpush.msk.msra.mxu3 %vm98_vm0, %v423_v61  ;;  %v546_v1 = vsel %vm545_vm15, %v423_v61, %v543_v60  ;;  %vm601_vm0 = vcmask 1045504  }
 0x484   :  { %v547_v32 = vadd.f32 %v546_v1, %v541_v0 }
 0x486   :  { %548 = vst [vmem:[#allocation11] sm:$0x3f] %v547_v32 }
 0x487   :  { %629 = dma.vmem_to_hbm [thread:$0]  %s625_s26, 128, %s627_s29, [#allocation12]  }
 0x4b8   :  { %592 = vperm.xlu1 %678, %v1055_v7   ;;  %v587_v7 = vpop.permute.xlu2 %586 }
 0x4b9   :  { %v589_v10 = vmul.f32 %v660_v33, %v587_v7 }
 0x4da   :  { %v440_v2 = vpop.trf.xlu1 }
 0x4db   :  { %653 = vmatmul.msk.f32.vlgmr.msra.gmra.mxu2 %vm456_vm13, %v440_v2 }
 0x4e2   :  { %v441_v3 = vpop.trf.xlu1 }
 0x4e3   :  { %654 = vmatmul.msk.f32.gmra.mxu2 %vm456_vm13, %v441_v3 }
 0x4ea   :  { %v442_v4 = vpop.trf.xlu1 }
 0x4eb   :  { %655 = vmatmul.msk.f32.gmra.mxu2 %vm456_vm13, %v442_v4 }
 0x4f2   :  { %v443_v5 = vpop.trf.xlu1 }
 0x4f3   :  { %656 = vmatmul.msk.f32.vlgmr.msra.gmra.mxu3 %vm456_vm13, %v443_v5 }
 0x4fa   :  { %v444_v6 = vpop.trf.xlu1 }
 0x4fb   :  { %657 = vmatmul.msk.f32.gmra.mxu3 %vm456_vm13, %v444_v6 }
 0x502   :  { %v445_v26 = vpop.trf.xlu1 }
 0x503   :  { %658 = vmatmul.msk.f32.gmra.mxu3 %vm456_vm13, %v445_v26 }
 0x52a   :  { %v593_v9 = vpop.permute.xlu1 %592 }
 0x52b   :  { %v595_v12 = vmul.f32 %v661_v35, %v593_v9 }
 0x52d   :  { %v596_v34 = vadd.f32 %v595_v12, %v589_v10 }
 0x52f   :  { %v602_v13 = vsel %vm601_vm0, %v600_v59, %v596_v34 }
 0x530   :  { %603 = vst [vmem:[%s1097_s5] sm:$0x7f] %v602_v13  ;;  %s876_s5 = smov [#allocation10]  }
 0x531   :  { %s610_s7 = sshll.u32 %s876_s5, 4  ;;  %s611_s7 = int_to_ptr.vmem [resolvable:$true] %s610_s7 }
 0x55e   :  { %v495_v15 = vpop.f32.mrf.mxu2 }
 0x55f   :  { %v513_v16 = vadd.f32 %v495_v15, %v991_v53 }
 0x561   :  { %519 = vst [vmem:[#allocation10] sm:$0xff] %v513_v16 }
 0x566   :  { %v498_v17 = vpop.f32.mrf.mxu2 }
 0x567   :  { %v514_v43 = vadd.f32 %v498_v17, %v988_v52 }
 0x569   :  { %520 = vst [vmem:[#allocation10 + $0x8] sm:$0xff] %v514_v43 }
 0x56e   :  { %v501_v18 = vpop.f32.mrf.mxu2 }
 0x56f   :  { %v515_v19 = vadd.f32 %v501_v18, %v985_v51 }
 0x571   :  { %521 = vst [vmem:[#allocation10 + $0x10] sm:$0xff] %v515_v19 }
 0x576   :  { %v504_v20 = vpop.f32.mrf.mxu3 }
 0x577   :  { %v516_v21 = vadd.f32 %v504_v20, %v981_v49 }
 0x579   :  { %522 = vst [vmem:[#allocation10 + $0x18] sm:$0xff] %v516_v21 }
 0x57e   :  { %v507_v22 = vpop.f32.mrf.mxu3 }
 0x57f   :  { %v517_v23 = vadd.f32 %v507_v22, %v979_v48 }
 0x581   :  { %523 = vst [vmem:[#allocation10 + $0x20] sm:$0xff] %v517_v23 }
 0x586   :  { %v510_v52 = vpop.f32.mrf.mxu3 }
 0x587   :  { %v518_v53 = vadd.f32 %v510_v52, %v977_v47 }
 0x589   :  { %524 = vst [vmem:[#allocation10 + $0x28] sm:$0x1] %v518_v53 }
 0x58a   :  { %618 = dma.vmem_to_hbm [thread:$0]  %s611_s7, 768, %s613_s13, [#allocation4], %s865_s9, %s865_s9, %s866_s10  }
 0x58b   :  { %860 = dma.done.wait [#allocation4], 768  }
 0x58c   :  { %861 = vsyncadd [#allocation4], 4294966528 }
 0x58d   :  { %862 = dma.done.wait [#allocation12], 128  }
 0x58e   :  { %863 = vsyncadd [#allocation12], 4294967168 }
 0x58f   :  { %640 = vsyncpa [#allocation3], 1 }
 0x590   :  { %641 = vsyncpa [#allocation6], 1 }
 0x591   :  { %642 = vsyncpa [#allocation9], 1 }
 0x592   :  { %643 = vsyncpa [#allocation4], 1 }
 0x593   :  { %644 = vsyncpa [#allocation12], 1 }

</bundles_post_ra>
